<compile_context>
chip_gen: v5e
topology: v5e:2x2
jax: 0.10.0
libtpu: 0.0.40
codegen_flags: <defaults>
</compile_context>

<pallas_src>
import math

import jax
import jax.numpy as jnp
from jax import lax
from jax.experimental import pallas as pl
from jax.experimental.pallas import tpu as pltpu


def _block_diag(w, reps):
    """(k, n) -> (reps*k, reps*n) block-diagonal with `reps` copies of w."""
    k, n = w.shape
    eye = jnp.eye(reps, dtype=w.dtype)
    # pure outer product (no contraction) -> exact in any dtype
    return jnp.einsum("rc,kn->rkcn", eye, w).reshape(reps * k, reps * n)


def _mlp_packed_kernel(x_ref, w1_ref, b1_ref, w2_ref, b2_ref, o_ref):
    # x arrives in f32 (one HBM pass); drop to bf16 only for the MXU operand.
    xb = x_ref[...].astype(jnp.bfloat16)
    # linear1: (Tp, PACK*Din) bf16 @ (PACK*Din, PACK*H) bf16 -> f32 accumulate
    h = jnp.dot(xb, w1_ref[...], preferred_element_type=jnp.float32)
    # bias + ReLU kept in f32 (v5e has no bf16 VPU arithmetic path)
    h = jnp.maximum(h + b1_ref[...], 0.0)
    # linear2 also bf16-in / f32-accumulate (keeps v5e off the MXU roofline)
    y = jnp.dot(h.astype(jnp.bfloat16), w2_ref[...],
                preferred_element_type=jnp.float32)
    o_ref[...] = (y + b2_ref[...]).astype(o_ref.dtype)


def writing_score_forward(x, w1, b1, w2, b2, *, batch_tile=32768,
                          out_dtype=jnp.float32):
    """Forward pass of WritingScoreModel.

    x:  (B, input_size) float32
    w1: (input_size, 8)   (PyTorch nn.Linear weight, transposed to (in, out))
    b1: (8,)
    w2: (8, output_size)
    b2: (output_size,)
    returns (B, output_size) in `out_dtype`
    """
    B, d_in = x.shape
    hidden = w1.shape[1]
    d_out = w2.shape[1]

    # Pack enough batch rows per packed row so the output width is a multiple
    # of 128 lanes (32 rows for output_size=4).
    pack = 128 // math.gcd(128, d_out)
    # TODO(synk): arbitrary input_size/output_size would need feature padding;
    # the module's shapes (32 -> 8 -> 4) satisfy the lane constraints directly.
    assert (d_in * pack) % 128 == 0 and (hidden * pack) % 128 == 0

    # Pad only to the next multiple of `pack` (<=31 rows) so the packed view
    # is a free row-major reshape of x; the grid handles ragged last blocks.
    bp = -(-B // pack)               # packed rows
    b_pad = bp * pack
    if b_pad != B:
        x = jnp.pad(x, ((0, b_pad - B), (0, 0)))
    x_packed = x.reshape(bp, pack * d_in)          # f32, no extra HBM pass

    # --- batch tile (in packed rows) ---
    tp = max(16, batch_tile // pack)
    tp = min(tp, 2048)               # VMEM cap (~27 MiB worst case; v7x-safe)
    if bp > 16:                      # keep >=2 grid steps (v7x megacore split)
        tp = min(tp, -(-bp // 2))
    tp = min(tp, bp)
    tp = max(16, ((tp + 15) // 16) * 16)   # multiple of 16 sublanes (bf16)
    n_tiles = -(-bp // tp)                 # last block may be ragged

    # Weights in bf16 (MXU operands), biases f32, all VMEM-resident.
    w1_blk = _block_diag(w1.astype(jnp.bfloat16), pack)   # (pack*din, pack*h)
    w2_blk = _block_diag(w2.astype(jnp.bfloat16), pack)   # (pack*h, pack*dout)
    b1_t = jnp.tile(jnp.asarray(b1, jnp.float32).reshape(1, hidden), (1, pack))
    b2_t = jnp.tile(jnp.asarray(b2, jnp.float32).reshape(1, d_out), (1, pack))

    # Constant index maps keep the weight/bias operands VMEM-resident (a
    # single DMA, not re-issued per grid step).
    resident = lambda a: pl.BlockSpec(a.shape, lambda i: (0,) * a.ndim)

    y_packed = pl.pallas_call(
        _mlp_packed_kernel,
        out_shape=jax.ShapeDtypeStruct((bp, pack * d_out), out_dtype),
        grid_spec=pltpu.PrefetchScalarGridSpec(
            num_scalar_prefetch=0,
            grid=(n_tiles,),
            in_specs=[
                pl.BlockSpec((tp, pack * d_in), lambda i: (i, 0)),  # streamed x
                resident(w1_blk),
                resident(b1_t),
                resident(w2_blk),
                resident(b2_t),
            ],
            out_specs=pl.BlockSpec((tp, pack * d_out), lambda i: (i, 0)),
        ),
        compiler_params=pltpu.CompilerParams(
            dimension_semantics=("parallel",),
            vmem_limit_bytes=48 * 1024 * 1024),
    )(x_packed, w1_blk, b1_t, w2_blk, b2_t)

    # Free row-major view back to (B, output_size).
    return y_packed.reshape(b_pad, d_out)[:B]


def reference_forward(x, w1, b1, w2, b2):
    # Mirror the kernel's bf16 MXU operands; math/accumulation in f32.
    xb = x.astype(jnp.bfloat16).astype(jnp.float32)
    w1b = w1.astype(jnp.bfloat16).astype(jnp.float32)
    h = jnp.maximum(
        jnp.dot(xb, w1b, precision=lax.Precision.HIGHEST) + b1.reshape(1, -1),
        0.0)
    hb = h.astype(jnp.bfloat16).astype(jnp.float32)
    w2b = w2.astype(jnp.bfloat16).astype(jnp.float32)
    return jnp.dot(hb, w2b, precision=lax.Precision.HIGHEST) + b2.reshape(1, -1)


if __name__ == "__main__":
    # Shapes consistent with the module: input_size=32, hidden=8, output_size=4.
    # Batch chosen non-multiple-of-32 to exercise the <=31-row pad, a 2-step
    # grid and a ragged last block.
    batch, input_size, hidden, output_size = 900, 32, 8, 4

    key = jax.random.PRNGKey(0)
    k_x, k_w1, k_b1, k_w2, k_b2 = jax.random.split(key, 5)

    x = jax.random.normal(k_x, (batch, input_size), dtype=jnp.float32)

    # Deterministic synthetic parameters, stored as (in, out) = transpose of
    # the PyTorch nn.Linear weight layout; biases 1-D like PyTorch.
    w1 = jax.random.normal(k_w1, (input_size, hidden), dtype=jnp.float32) * 0.1
    b1 = jax.random.normal(k_b1, (hidden,), dtype=jnp.float32) * 0.1
    w2 = jax.random.normal(k_w2, (hidden, output_size), dtype=jnp.float32) * 0.1
    b2 = jax.random.normal(k_b2, (output_size,), dtype=jnp.float32) * 0.1

    y = writing_score_forward(x, w1, b1, w2, b2)
    y = jax.block_until_ready(y)

    y_ref = reference_forward(x, w1, b1, w2, b2)
    assert y.shape == (batch, output_size)
    assert jnp.allclose(y, y_ref, atol=2e-2, rtol=2e-2), "mismatch vs reference"

    print("KERNEL_OK")
</pallas_src>

<mosaic_0001>
module attributes {stable_mosaic.version = 11 : i64} {
  func.func @_mlp_packed_kernel(%arg0: i32, %arg1: memref<16x1024xf32, #tpu.memory_space<vmem>>, %arg2: memref<1024x256xbf16, #tpu.memory_space<vmem>>, %arg3: memref<1x256xf32, #tpu.memory_space<vmem>>, %arg4: memref<256x128xbf16, #tpu.memory_space<vmem>>, %arg5: memref<1x128xf32, #tpu.memory_space<vmem>>, %arg6: memref<16x128xf32, #tpu.memory_space<vmem>>) attributes {dimension_semantics = [#tpu.dimension_semantics<parallel>], iteration_bounds = array<i64: 2>, scalar_prefetch = 0 : i64, scratch_operands = 0 : i64, tpu.core_type = #tpu.core_type<tc>, window_params = [{transform_indices = @transform_0, window_bounds = array<i64: 16, 1024>}, {pipeline_mode = #tpu.pipeline_mode<synchronous>, transform_indices = @transform_1, window_bounds = array<i64: 1024, 256>}, {pipeline_mode = #tpu.pipeline_mode<synchronous>, transform_indices = @transform_2, window_bounds = array<i64: 1, 256>}, {pipeline_mode = #tpu.pipeline_mode<synchronous>, transform_indices = @transform_3, window_bounds = array<i64: 256, 128>}, {pipeline_mode = #tpu.pipeline_mode<synchronous>, transform_indices = @transform_4, window_bounds = array<i64: 1, 128>}, {transform_indices = @transform_5, window_bounds = array<i64: 16, 128>}]} {
    %c0 = arith.constant 0 : index
    %c0_0 = arith.constant 0 : index
    %0 = vector.load %arg1[%c0, %c0_0] : memref<16x1024xf32, #tpu.memory_space<vmem>>, vector<16x1024xf32>
    %1 = arith.truncf %0 : vector<16x1024xf32> to vector<16x1024xbf16>
    %c0_1 = arith.constant 0 : index
    %c0_2 = arith.constant 0 : index
    %2 = vector.load %arg2[%c0_1, %c0_2] : memref<1024x256xbf16, #tpu.memory_space<vmem>>, vector<1024x256xbf16>
    %cst = arith.constant dense<0.000000e+00> : vector<16x256xf32>
    %3 = tpu.matmul %1, %2, %cst {dimension_numbers = #tpu.dot_dimension_numbers<[1], [0], [0], [1], [0, 0, 1, 1], [], []>} : vector<16x1024xbf16>, vector<1024x256xbf16>, vector<16x256xf32> -> vector<16x256xf32>
    %c0_3 = arith.constant 0 : index
    %c0_4 = arith.constant 0 : index
    %4 = vector.load %arg3[%c0_3, %c0_4] : memref<1x256xf32, #tpu.memory_space<vmem>>, vector<1x256xf32>
    %5 = vector.broadcast %4 : vector<1x256xf32> to vector<16x256xf32>
    %6 = arith.addf %3, %5 : vector<16x256xf32>
    %cst_5 = arith.constant 0.000000e+00 : f32
    %7 = vector.broadcast %cst_5 : f32 to vector<16x256xf32>
    %8 = arith.maximumf %6, %7 : vector<16x256xf32>
    %9 = arith.truncf %8 : vector<16x256xf32> to vector<16x256xbf16>
    %c0_6 = arith.constant 0 : index
    %c0_7 = arith.constant 0 : index
    %10 = vector.load %arg4[%c0_6, %c0_7] : memref<256x128xbf16, #tpu.memory_space<vmem>>, vector<256x128xbf16>
    %cst_8 = arith.constant dense<0.000000e+00> : vector<16x128xf32>
    %11 = tpu.matmul %9, %10, %cst_8 {dimension_numbers = #tpu.dot_dimension_numbers<[1], [0], [0], [1], [0, 0, 1, 1], [], []>} : vector<16x256xbf16>, vector<256x128xbf16>, vector<16x128xf32> -> vector<16x128xf32>
    %c0_9 = arith.constant 0 : index
    %c0_10 = arith.constant 0 : index
    %12 = vector.load %arg5[%c0_9, %c0_10] : memref<1x128xf32, #tpu.memory_space<vmem>>, vector<1x128xf32>
    %13 = vector.broadcast %12 : vector<1x128xf32> to vector<16x128xf32>
    %14 = arith.addf %11, %13 : vector<16x128xf32>
    %c0_11 = arith.constant 0 : index
    %c0_12 = arith.constant 0 : index
    %15 = vector.load %arg6[%c0_11, %c0_12] : memref<16x128xf32, #tpu.memory_space<vmem>>, vector<16x128xf32>
    tpu.vector_store %arg6[%c0_11, %c0_12], %14 {strides = array<i32>} : memref<16x128xf32, #tpu.memory_space<vmem>>, vector<16x128xf32>,
    return
  }
  func.func @transform_0(%arg0: i32) -> (i32, i32) {
    %c0_i32 = arith.constant 0 : i32
    %c0_i32_0 = arith.constant 0 : i32
    return %arg0, %c0_i32 : i32, i32
  }
  func.func @transform_1(%arg0: i32) -> (i32, i32) {
    %c0_i32 = arith.constant 0 : i32
    %c0_i32_0 = arith.constant 0 : i32
    %c0_i32_1 = arith.constant 0 : i32
    return %c0_i32, %c0_i32_0 : i32, i32
  }
  func.func @transform_2(%arg0: i32) -> (i32, i32) {
    %c0_i32 = arith.constant 0 : i32
    %c0_i32_0 = arith.constant 0 : i32
    %c0_i32_1 = arith.constant 0 : i32
    return %c0_i32, %c0_i32_0 : i32, i32
  }
  func.func @transform_3(%arg0: i32) -> (i32, i32) {
    %c0_i32 = arith.constant 0 : i32
    %c0_i32_0 = arith.constant 0 : i32
    %c0_i32_1 = arith.constant 0 : i32
    return %c0_i32, %c0_i32_0 : i32, i32
  }
  func.func @transform_4(%arg0: i32) -> (i32, i32) {
    %c0_i32 = arith.constant 0 : i32
    %c0_i32_0 = arith.constant 0 : i32
    %c0_i32_1 = arith.constant 0 : i32
    return %c0_i32, %c0_i32_0 : i32, i32
  }
  func.func @transform_5(%arg0: i32) -> (i32, i32) {
    %c0_i32 = arith.constant 0 : i32
    %c0_i32_0 = arith.constant 0 : i32
    return %arg0, %c0_i32 : i32, i32
  }
}

</mosaic_0001>

<bundles_post_ra>
// kernel: tpu_custom_call.1
= control target key start
LH: loop header
LB: loop body
LE: loop exit
PB: predicated region body
PF: predicated region fallthrough
CT: control target
= control target key end

     0   :  { %10 = vsyncpa [#allocation3], 0  ;;  %s2890_s0 = inlined_call_operand.hbm [shape: f32[29,1024], index: 0, kind: input, shape index: {}]   ;;  %s2891_s1 = inlined_call_operand.hbm [shape: bf16[1024,256], index: 1, kind: input, shape index: {}]   ;;  %s2892_s2 = inlined_call_operand.hbm [shape: f32[1,256], index: 2, kind: input, shape index: {}]   ;;  %s2893_s3 = inlined_call_operand.hbm [shape: bf16[256,128], index: 3, kind: input, shape index: {}]   ;;  %s2894_s4 = inlined_call_operand.vmem [shape: f32[1,128], index: 4, kind: input, shape index: {}]   ;;  %s2895_s5 = inlined_call_operand.hbm [shape: f32[29,128], index: 5, kind: output, shape index: {}]  }
   0x1   :  { %12 = vsyncpa [#allocation3 + $0x1], 0 }
   0x2   :  { %13 = vsyncpa [#allocation6], 0 }
   0x3   :  { %14 = vsyncpa [#allocation9], 0 }
   0x4   :  { %15 = vsyncpa [#allocation4], 0 }
   0x5   :  { %17 = vsyncpa [#allocation4 + $0x1], 0  ;;  %s2669_s18 = smov 0   ;;  %s2671_s19 = smov 0  }
   0x6   :  { %s2673_s20 = smov 0   ;;  %s2675_s21 = smov 0  }
   0x7 LB: > { %s2690_s22 = sadd.s32 4294967295, %s2627_s21   ;;  %s1604_s23 = sadd.s32 4294967294, %s2627_s21   ;;  %s2627_s21 = sphi %s2675_s21, %s2906_s21   ;;  %s2623_s20 = sphi %s2673_s20, %s2905_s20   ;;  %s2619_s19 = sphi %s2671_s19, %s2904_s19   ;;  %s2615_s18 = sphi %s2669_s18, %s2903_s18  }
   0x8   : > { %p43_p0 = scmp.ne.s32.totalorder %s2619_s19, %s2615_s18  ;;  %p44_p1 = scmp.eq.s32.totalorder %s2690_s22, 0 }
   0x9   : > { %p151_p2 = scmp.eq.s32.totalorder %s2690_s22, 1  ;;  %p157_p3 = scmp.eq.s32.totalorder %s1604_s23, 1 }
   0xa   : > { %p2699_p4 = por %p44_p1, %p43_p0  ;;  %p1605_p5 = scmp.ge.s32.totalorder %s2627_s21, 1 }
   0xb   : > { %p2704_p6 = por %p157_p3, %p43_p0  ;;  %p164_p7 = scmp.lt.s32.totalorder %s2627_s21, 3 }
   0xc   : > { %s175_s28 = sshll.u32 %s2891_s1, 4  ;;  %s2629_s30 = smov [#allocation5]   ;;  %s176_s28 = int_to_ptr.hbm [resolvable:$true] %s175_s28 }
   0xd   : > { %p2712_p8 = pnand %p1605_p5, %p164_p7  ;;  %s177_s6 = sshll.u32 %s2629_s30, 4  ;;  %s178_s6 = int_to_ptr.vmem [resolvable:$true] %s177_s6 }
   0xe   : > { %s190_s10 = sshll.u32 %s2892_s2, 4  ;;  %s2630_s11 = smov 128   ;;  %s191_s10 = int_to_ptr.hbm [resolvable:$true] %s190_s10 }
   0xf   : > { %p2364_p9 = pneg %p2712_p8  ;;  %s2631_s12 = smov 8  }
  0x10   : > { %s2632_s13 = smov [#allocation7]   ;;  %s201_s17 = sshll.u32 %s2893_s3, 4  ;;  %s202_s17 = int_to_ptr.hbm [resolvable:$true] %s201_s17 }
  0x11   : > { %p2720_p10 = pnand %p2364_p9, %p44_p1  ;;  %s192_s14 = sshll.u32 %s2632_s13, 4  ;;  %s193_s14 = int_to_ptr.vmem [resolvable:$true] %s192_s14 }
  0x12   : > { %s2633_s23 = smov [#allocation8]   ;;  %s2634_s27 = smov 64  }
  0x13   : > { %2367 = dma.hbm_to_vmem [thread:$0]  (!%p2720_p10), %s176_s28, 16384, %s178_s6, [#allocation6], %s2630_s11, %s2630_s11, %s2631_s12  }
  0x14   : > { %2370 = dma.hbm_to_vmem [thread:$0]  (!%p2720_p10), %s191_s10, 32, %s193_s14, [#allocation6]  }
  0x15   : > { %s203_s26 = sshll.u32 %s2633_s23, 4  ;;  %s2635_s28 = smov 4   ;;  %s204_s26 = int_to_ptr.vmem [resolvable:$true] %s203_s26 }
  0x16   : > { %2373 = dma.hbm_to_vmem [thread:$0]  (!%p2720_p10), %s202_s17, 2048, %s204_s26, [#allocation9], %s2634_s27, %s2634_s27, %s2635_s28  }
  0x17   : > { %s2740_s30 = sadd.s32 1, %s2627_s21   ;;  %s30_s8 = sadd.s32 1, %s2623_s20 }
  0x18   : > { %s27_s6 = ssub.s32 %s2627_s21, %s2740_s30  ;;  %p37_p13 = scmp.ne.s32.totalorder %s2623_s20, %s2619_s19 }
  0x19   : > { %p28_p12 = scmp.eq.s32.totalorder %s27_s6, 0  ;;  %p38_p0 = scmp.eq.s32.totalorder %s2627_s21, 0 }
  0x1a   : > { %p2385_p3 = scmp.lt.s32.totalorder %s2627_s21, 2  ;;  %p2754_p7 = por %p151_p2, %p37_p13 }
  0x1b   : > { %s2750_s9 = scalar_select %p28_p12, %s2623_s20, %s30_s8  }
  0x1c   : > { %p39_p5 = por %p38_p0, %p37_p13  ;;  %s220_s7 = sand.u32 1, %s2623_s20  }
  0x1d   : > { %s2202_s11 = sshll.u32 %s2627_s21, 7  ;;  %s1610_s12 = sshll.u32 %s220_s7, 7 }
  0x1e   : > { %s230_s15 = scalar_lea.hbm %s2890_s0, %s2202_s11  ;;  %s224_s17 = scalar_lea.vmem [#allocation2], %s1610_s12 }
  0x1f   : > { %s231_s16 = sshll.u32 %s230_s15, 4  ;;  %s233_s23 = sshll.u32 %s224_s17, 4  ;;  %s232_s16 = int_to_ptr.hbm [resolvable:$true] %s231_s16  ;;  %s234_s23 = int_to_ptr.vmem [resolvable:$true] %s233_s23 }
  0x20   : > { %p2765_p9 = pnand %p2385_p3, %p39_p5  ;;  %s221_s28 = scalar_lea.sflag [#allocation3], %s220_s7 }
  0x21   : > { %s2523_s6 = sshra.s32 %s232_s16, 4  ;;  %s2530_s13 = scalar_lea.hbm %s2890_s0, 256  ;;  %s2524_s6 = int_to_ptr.hbm [resolvable:$true] %s2523_s6 }
  0x22   : > { %s2525_s8 = scalar_lea.hbm %s2524_s6, 128  ;;  %p2527_p10 = pneg %p2765_p9 }
  0x23   : > { %p2526_p2 = scmp.ne.s32.totalorder %s2524_s6, %s2525_s8  ;;  %p2531_p0 = scmp.lt.s32.totalorder %s2524_s6, %s2890_s0 }
  0x24   : > { %p2532_p3 = scmp.lt.s32.totalorder %s2530_s13, %s2525_s8 }
  0x25   : > { %p2528_p12 = pnand %p2527_p10, %p2526_p2 }
  0x26   : > { %p2533_p5 = por %p2532_p3, %p2531_p0 }
  0x27   : > { %p2529_p13 = pneg %p2528_p12 }
  0x29   : > { %p2534_p11 = pnand %p2533_p5, %p2529_p13 }
  0x2b   : > { %2537 = shalt.err (!%p2534_p11)
}
  0x2c   : > { %s2636_s7 = smov 1024   ;;  %245 = sbr.rel (%p2712_p8) target bundleno = 474 (0x1da), region = 40 }
  0x2d   : > { %2377 = dma.hbm_to_vmem [thread:$0]  (!%p2765_p9), %s232_s16, 2048, %s234_s23, %s221_s28, %s2636_s7, %s2636_s7, %s2634_s27  }
  0x2e   : > { %s2783_s17 = sand.u32 (!%p2712_p8), 1, %s2619_s19  }
  0x2f   : > { %s1615_s11 = sshll.u32 (!%p2712_p8), %s2783_s17, 7  ;;  %s248_s6 = scalar_lea.sflag (!%p2712_p8), [#allocation3], %s2783_s17 }
  0x30   : > { %s2787_s8 = scalar_lea.vmem (!%p2712_p8), [#allocation2], %s1615_s11 }
  0x31   : > { %2598 = dma.done.wait (%p2699_p4), %s248_s6, 2048  }
  0x32   : > { %2600 = vsyncadd (%p2699_p4), %s248_s6, 4294965248 }
  0x33   : > { %2602 = dma.done.wait (%p44_p1), [#allocation6], 16416  }
  0x34   : > { %2604 = vsyncadd (%p44_p1), [#allocation6], 4294950880 }
  0x35   : > { %2606 = dma.done.wait (%p44_p1), [#allocation9], 2048  }
  0x36   : > { %2608 = vsyncadd (%p44_p1), [#allocation9], 4294965248  ;;  %v1678_v0 = vld [vmem:[#allocation5 + $0x70] sm:$0xf]  ;;  %v2218_v1 = vld [vmem:[#allocation5 + $0x74] sm:$0xf0] }
  0x37   : > { %v1742_v2 = vld [vmem:[#allocation5 + $0xf0] sm:$0xf]  ;;  %v1679_v3 = vor.u32 %v2218_v1, %v1678_v0  ;;  %v2234_v4 = vld [vmem:[#allocation5 + $0xf4] sm:$0xf0]  ;;  %v1670_v11 = vld [vmem:[#allocation5 + $0x60] sm:$0xf] }
  0x38   : > { %v1806_v5 = vld [vmem:[#allocation5 + $0x170] sm:$0xf]  ;;  %v2250_v6 = vld [vmem:[#allocation5 + $0x174] sm:$0xf0]  ;;  %v1743_v7 = vor.u32 %v2234_v4, %v1742_v2  ;;  %v2216_v13 = vld [vmem:[#allocation5 + $0x64] sm:$0xf0] }
  0x39   : > { %v1807_v8 = vor.u32 %v2250_v6, %v1806_v5  ;;  %v1870_v9 = vld [vmem:[#allocation5 + $0x1f0] sm:$0xf]  ;;  %v2266_v10 = vld [vmem:[#allocation5 + $0x1f4] sm:$0xf0]  ;;  %1094 = vmatpush.bf16.msra.mxu0 %v1679_v3  ;;  %v1734_v14 = vld [vmem:[#allocation5 + $0xe0] sm:$0xf]  ;;  %v1671_v16 = vor.u32 %v2216_v13, %v1670_v11 }
  0x3a   : > { %v1871_v12 = vor.u32 %v2266_v10, %v1870_v9  ;;  %v2232_v15 = vld [vmem:[#allocation5 + $0xe4] sm:$0xf0]  ;;  %1108 = vmatpush.bf16.msra.mxu1 %v1743_v7  ;;  %v1798_v18 = vld [vmem:[#allocation5 + $0x160] sm:$0xf]  ;;  %v1662_v23 = vld [vmem:[#allocation5 + $0x50] sm:$0xf] }
  0x3b   : > { %1122 = vmatpush.bf16.msra.mxu2 %v1807_v8  ;;  %v1735_v17 = vor.u32 %v2232_v15, %v1734_v14  ;;  %v2248_v19 = vld [vmem:[#allocation5 + $0x164] sm:$0xf0]  ;;  %v1862_v20 = vld [vmem:[#allocation5 + $0x1e0] sm:$0xf]  ;;  %v2214_v24 = vld [vmem:[#allocation5 + $0x54] sm:$0xf0] }
  0x3c   : > { %1136 = vmatpush.bf16.msra.mxu3 %v1871_v12  ;;  %v1799_v21 = vor.u32 %v2248_v19, %v1798_v18  ;;  %v2264_v22 = vld [vmem:[#allocation5 + $0x1e4] sm:$0xf0]  ;;  %v1726_v26 = vld [vmem:[#allocation5 + $0xd0] sm:$0xf]  ;;  %v2230_v27 = vld [vmem:[#allocation5 + $0xd4] sm:$0xf0]  ;;  %v1663_v29 = vor.u32 %v2214_v24, %v1662_v23 }
  0x3d   : > { %v1863_v25 = vor.u32 %v2264_v22, %v1862_v20  ;;  %v1790_v28 = vld [vmem:[#allocation5 + $0x150] sm:$0xf]  ;;  %1095 = vmatpush.bf16.msra.mxu0 %v1671_v16  ;;  %v2246_v30 = vld [vmem:[#allocation5 + $0x154] sm:$0xf0]  ;;  %v1727_v33 = vor.u32 %v2230_v27, %v1726_v26  ;;  %v1654_v35 = vld [vmem:[#allocation5 + $0x40] sm:$0xf] }
  0x3e   : > { %v1854_v31 = vld [vmem:[#allocation5 + $0x1d0] sm:$0xf]  ;;  %v2262_v32 = vld [vmem:[#allocation5 + $0x1d4] sm:$0xf0]  ;;  %1109 = vmatpush.bf16.msra.mxu1 %v1735_v17  ;;  %v1791_v34 = vor.u32 %v2246_v30, %v1790_v28  ;;  %v2212_v36 = vld [vmem:[#allocation5 + $0x44] sm:$0xf0] }
  0x3f   : > { %1123 = vmatpush.bf16.msra.mxu2 %v1799_v21  ;;  %v1718_v37 = vld [vmem:[#allocation5 + $0xc0] sm:$0xf]  ;;  %v1855_v38 = vor.u32 %v2262_v32, %v1854_v31  ;;  %v2228_v39 = vld [vmem:[#allocation5 + $0xc4] sm:$0xf0]  ;;  %v1655_v44 = vor.u32 %v2212_v36, %v1654_v35  ;;  %v1646_v47 = vld [vmem:[#allocation5 + $0x30] sm:$0xf] }
  0x40   : > { %1137 = vmatpush.bf16.msra.mxu3 %v1863_v25  ;;  %v1782_v40 = vld [vmem:[#allocation5 + $0x140] sm:$0xf]  ;;  %v2244_v41 = vld [vmem:[#allocation5 + $0x144] sm:$0xf0]  ;;  %v1719_v45 = vor.u32 %v2228_v39, %v1718_v37  ;;  %v2210_v48 = vld [vmem:[#allocation5 + $0x34] sm:$0xf0] }
  0x41   : > { %v1846_v42 = vld [vmem:[#allocation5 + $0x1c0] sm:$0xf]  ;;  %v2260_v43 = vld [vmem:[#allocation5 + $0x1c4] sm:$0xf0]  ;;  %1096 = vmatpush.bf16.msra.mxu0 %v1663_v29  ;;  %v1783_v46 = vor.u32 %v2244_v41, %v1782_v40  ;;  %v1710_v49 = vld [vmem:[#allocation5 + $0xb0] sm:$0xf]  ;;  %v1647_v56 = vor.u32 %v2210_v48, %v1646_v47 }
  0x42   : > { %1110 = vmatpush.bf16.msra.mxu1 %v1727_v33  ;;  %v1847_v50 = vor.u32 %v2260_v43, %v1846_v42  ;;  %v2226_v51 = vld [vmem:[#allocation5 + $0xb4] sm:$0xf0]  ;;  %v1774_v52 = vld [vmem:[#allocation5 + $0x130] sm:$0xf]  ;;  %v1638_v59 = vld [vmem:[#allocation5 + $0x20] sm:$0xf] }
  0x43   : > { %1124 = vmatpush.bf16.msra.mxu2 %v1791_v34  ;;  %v2242_v53 = vld [vmem:[#allocation5 + $0x134] sm:$0xf0]  ;;  %v1838_v54 = vld [vmem:[#allocation5 + $0x1b0] sm:$0xf]  ;;  %v1711_v57 = vor.u32 %v2226_v51, %v1710_v49  ;;  %v2208_v60 = vld [vmem:[#allocation5 + $0x24] sm:$0xf0] }
  0x44   : > { %1138 = vmatpush.bf16.msra.mxu3 %v1855_v38  ;;  %v2258_v55 = vld [vmem:[#allocation5 + $0x1b4] sm:$0xf0]  ;;  %v1775_v58 = vor.u32 %v2242_v53, %v1774_v52  ;;  %v1702_v61 = vld [vmem:[#allocation5 + $0xa0] sm:$0xf]  ;;  %v2224_v63 = vld [vmem:[#allocation5 + $0xa4] sm:$0xf0]  ;;  %v1639_v4 = vor.u32 %v2208_v60, %v1638_v59 }
  0x45   : > { %1097 = vmatpush.bf16.msra.mxu0 %v1655_v44  ;;  %v1839_v62 = vor.u32 %v2258_v55, %v1838_v54  ;;  %v1766_v0 = vld [vmem:[#allocation5 + $0x120] sm:$0xf]  ;;  %v2240_v1 = vld [vmem:[#allocation5 + $0x124] sm:$0xf0]  ;;  %v1703_v5 = vor.u32 %v2224_v63, %v1702_v61  ;;  %v1630_v7 = vld [vmem:[#allocation5 + $0x10] sm:$0xf] }
  0x46   : > { %1111 = vmatpush.bf16.msra.mxu1 %v1719_v45  ;;  %v1830_v2 = vld [vmem:[#allocation5 + $0x1a0] sm:$0xf]  ;;  %v2256_v3 = vld [vmem:[#allocation5 + $0x1a4] sm:$0xf0]  ;;  %v1767_v6 = vor.u32 %v2240_v1, %v1766_v0  ;;  %v2206_v8 = vld [vmem:[#allocation5 + $0x14] sm:$0xf0] }
  0x47   : > { %1125 = vmatpush.bf16.msra.mxu2 %v1783_v46  ;;  %v1694_v9 = vld [vmem:[#allocation5 + $0x90] sm:$0xf]  ;;  %v1831_v10 = vor.u32 %v2256_v3, %v1830_v2  ;;  %v2222_v11 = vld [vmem:[#allocation5 + $0x94] sm:$0xf0]  ;;  %v1631_v16 = vor.u32 %v2206_v8, %v1630_v7  ;;  %v1622_v17 = vld [vmem:[#allocation5] sm:$0xf] }
  0x48   : > { %1139 = vmatpush.bf16.msra.mxu3 %v1847_v50  ;;  %v1758_v12 = vld [vmem:[#allocation5 + $0x110] sm:$0xf]  ;;  %v2238_v13 = vld [vmem:[#allocation5 + $0x114] sm:$0xf0]  ;;  %v2204_v18 = vld [vmem:[#allocation5 + $0x4] sm:$0xf0]  ;;  %v1695_v19 = vor.u32 %v2222_v11, %v1694_v9 }
  0x49   : > { %1098 = vmatpush.bf16.msra.mxu0 %v1647_v56  ;;  %v1822_v14 = vld [vmem:[#allocation5 + $0x190] sm:$0xf]  ;;  %v2254_v15 = vld [vmem:[#allocation5 + $0x194] sm:$0xf0]  ;;  %v1759_v20 = vor.u32 %v2238_v13, %v1758_v12  ;;  %v1686_v21 = vld [vmem:[#allocation5 + $0x80] sm:$0xf]  ;;  %v1623_v31 = vor.u32 %v2204_v18, %v1622_v17 }
  0x4a   : > { %1112 = vmatpush.bf16.msra.mxu1 %v1711_v57  ;;  %v2220_v22 = vld [vmem:[#allocation5 + $0x84] sm:$0xf0]  ;;  %v1750_v23 = vld [vmem:[#allocation5 + $0x100] sm:$0xf]  ;;  %v1823_v24 = vor.u32 %v2254_v15, %v1822_v14  ;;  %v1934_v28 = vld [vmem:[#allocation5 + $0x270] sm:$0xf] }
  0x4b   : > { %1126 = vmatpush.bf16.msra.mxu2 %v1775_v58  ;;  %v2236_v25 = vld [vmem:[#allocation5 + $0x104] sm:$0xf0]  ;;  %v1814_v26 = vld [vmem:[#allocation5 + $0x180] sm:$0xf]  ;;  %v2282_v29 = vld [vmem:[#allocation5 + $0x274] sm:$0xf0]  ;;  %v1687_v35 = vor.u32 %v2220_v22, %v1686_v21 }
  0x4c   : > { %1140 = vmatpush.bf16.msra.mxu3 %v1839_v62  ;;  %v2252_v27 = vld [vmem:[#allocation5 + $0x184] sm:$0xf0]  ;;  %v1998_v30 = vld [vmem:[#allocation5 + $0x2f0] sm:$0xf]  ;;  %v2298_v32 = vld [vmem:[#allocation5 + $0x2f4] sm:$0xf0]  ;;  %v1751_v36 = vor.u32 %v2236_v25, %v1750_v23  ;;  %v1935_v40 = vor.u32 %v2282_v29, %v1934_v28 }
  0x4d   : > { %1099 = vmatpush.bf16.msra.mxu0 %v1639_v4  ;;  %v2062_v33 = vld [vmem:[#allocation5 + $0x370] sm:$0xf]  ;;  %v2314_v34 = vld [vmem:[#allocation5 + $0x374] sm:$0xf0]  ;;  %v1815_v39 = vor.u32 %v2252_v27, %v1814_v26  ;;  %v1926_v41 = vld [vmem:[#allocation5 + $0x260] sm:$0xf]  ;;  %v1999_v43 = vor.u32 %v2298_v32, %v1998_v30 }
  0x4e   : > { %1113 = vmatpush.bf16.msra.mxu1 %v1703_v5  ;;  %v2126_v37 = vld [vmem:[#allocation5 + $0x3f0] sm:$0xf]  ;;  %v2330_v38 = vld [vmem:[#allocation5 + $0x3f4] sm:$0xf0]  ;;  %v2280_v42 = vld [vmem:[#allocation5 + $0x264] sm:$0xf0]  ;;  %v2063_v44 = vor.u32 %v2314_v34, %v2062_v33 }
  0x4f   : > { %1127 = vmatpush.bf16.msra.mxu2 %v1767_v6  ;;  %v1990_v45 = vld [vmem:[#allocation5 + $0x2e0] sm:$0xf]  ;;  %v2296_v46 = vld [vmem:[#allocation5 + $0x2e4] sm:$0xf0]  ;;  %v2127_v48 = vor.u32 %v2330_v38, %v2126_v37  ;;  %v298_v54 = vld [vmem:[%s2787_s8 + $0x10] sm:$0xff]  ;;  %v1927_v55 = vor.u32 %v2280_v42, %v1926_v41  ;;  %s1619_s27 = sshll.u32 %s2783_s17, 4 }
  0x50   : > { %1141 = vmatpush.bf16.msra.mxu3 %v1831_v10  ;;  %v2054_v47 = vld [vmem:[#allocation5 + $0x360] sm:$0xf]  ;;  %v2312_v49 = vld [vmem:[#allocation5 + $0x364] sm:$0xf0]  ;;  %v1918_v56 = vld [vmem:[#allocation5 + $0x250] sm:$0xf]  ;;  %v1991_v60 = vor.u32 %v2296_v46, %v1990_v45 }
  0x51   : > { %1100 = vmatpush.bf16.msra.mxu0 %v1631_v16  ;;  %v2118_v50 = vld [vmem:[#allocation5 + $0x3e0] sm:$0xf]  ;;  %v2328_v51 = vld [vmem:[#allocation5 + $0x3e4] sm:$0xf0]  ;;  %v2278_v57 = vld [vmem:[#allocation5 + $0x254] sm:$0xf0]  ;;  %v2055_v61 = vor.u32 %v2312_v49, %v2054_v47 }
  0x52   : > { %1114 = vmatpush.bf16.msra.mxu1 %v1695_v19  ;;  %v296_v52 = vld [vmem:[%s2787_s8] sm:$0xff]  ;;  %v306_v59 = vld [vmem:[%s2787_s8 + $0x50] sm:$0xff]  ;;  %v2294_v63 = vld [vmem:[#allocation5 + $0x2d4] sm:$0xf0]  ;;  %v2119_v2 = vor.u32 %v2328_v51, %v2118_v50  ;;  %v1919_v9 = vor.u32 %v2278_v57, %v1918_v56  ;;  %s2347_s16 = sshll.u32 %s2690_s22, 4  ;;  %s293_s12 = scalar_lea.vmem [#allocation10], %s1619_s27 }
  0x53   : > { %1128 = vmatpush.bf16.msra.mxu2 %v1759_v20  ;;  %v304_v53 = vld [vmem:[%s2787_s8 + $0x40] sm:$0xff]  ;;  %v1982_v62 = vld [vmem:[#allocation5 + $0x2d0] sm:$0xf]  ;;  %v2807_v1 = vpack.c.bf16 %v306_v59, %v298_v54  ;;  %v2310_v3 = vld [vmem:[#allocation5 + $0x354] sm:$0xf0]  ;;  %s1498_s28 = scalar_lea.hbm %s2895_s5, %s2347_s16  ;;  %s1499_s13 = sshll.u32 %s293_s12, 4  ;;  %s1500_s13 = int_to_ptr.vmem [resolvable:$true] %s1499_s13 }
  0x54   : > { %1142 = vmatpush.bf16.msra.mxu3 %v1823_v24  ;;  %v2804_v58 = vpack.c.bf16 %v304_v53, %v296_v52  ;;  %v2046_v0 = vld [vmem:[#allocation5 + $0x350] sm:$0xf]  ;;  %v2326_v5 = vld [vmem:[#allocation5 + $0x3d4] sm:$0xf0]  ;;  %v297_v6 = vld [vmem:[%s2787_s8 + $0x8] sm:$0xff]  ;;  %v1983_v12 = vor.u32 %v2294_v63, %v1982_v62  ;;  %s1501_s14 = sshll.u32 %s1498_s28, 4  ;;  %s1502_s14 = int_to_ptr.hbm [resolvable:$true] %s1501_s14 }
  0x55   : > { %1101 = vmatpush.bf16.msra.mxu0 %v1623_v31  ;;  %v2110_v4 = vld [vmem:[#allocation5 + $0x3d0] sm:$0xf]  ;;  %v305_v7 = vld [vmem:[%s2787_s8 + $0x48] sm:$0xff]  ;;  %v299_v8 = vld [vmem:[%s2787_s8 + $0x18] sm:$0xff]  ;;  %v2047_v13 = vor.u32 %v2310_v3, %v2046_v0  ;;  %s1487_s15 = scalar_lea.sflag [#allocation4], %s2783_s17  ;;  %s2567_s22 = sshra.s32 %s1502_s14, 4  ;;  %s2568_s22 = int_to_ptr.hbm [resolvable:$true] %s2567_s22 }
  0x56   : > { %1115 = vmatpush.bf16.msra.mxu1 %v1687_v35  ;;  %v2814_v10 = vpack.c.bf16 %v305_v7, %v297_v6  ;;  %v307_v11 = vld [vmem:[%s2787_s8 + $0x58] sm:$0xff]  ;;  %v1910_v14 = vld [vmem:[#allocation5 + $0x240] sm:$0xf]  ;;  %v2276_v15 = vld [vmem:[#allocation5 + $0x244] sm:$0xf0]  ;;  %v2111_v18 = vor.u32 %v2326_v5, %v2110_v4  ;;  %s2569_s7 = scalar_lea.hbm %s2568_s22, 16  ;;  %p2574_p11 = scmp.lt.s32.totalorder %s2568_s22, %s2895_s5 }
  0x57   : > { %1129 = vmatpush.bf16.msra.mxu2 %v1751_v36  ;;  %v1974_v16 = vld [vmem:[#allocation5 + $0x2c0] sm:$0xf]  ;;  %v2817_v17 = vpack.c.bf16 %v307_v11, %v299_v8  ;;  %v2292_v19 = vld [vmem:[#allocation5 + $0x2c4] sm:$0xf0]  ;;  %v1911_v24 = vor.u32 %v2276_v15, %v1910_v14  ;;  %v1902_v27 = vld [vmem:[#allocation5 + $0x230] sm:$0xf]  ;;  %p2570_p1 = scmp.ne.s32.totalorder %s2568_s22, %s2569_s7 }
  0x58   : > { %1143 = vmatpush.bf16.msra.mxu3 %v1815_v39  ;;  %1102 = vmatmul.bf16.vlgmr.msra.gmra.mxu0 %v2804_v58  ;;  %v2038_v20 = vld [vmem:[#allocation5 + $0x340] sm:$0xf]  ;;  %v2308_v21 = vld [vmem:[#allocation5 + $0x344] sm:$0xf0]  ;;  %v1975_v25 = vor.u32 %v2292_v19, %v1974_v16  ;;  %v2274_v28 = vld [vmem:[#allocation5 + $0x234] sm:$0xf0] }
  0x59   : > { %1150 = vmatpush.bf16.msrb.mxu0 %v1935_v40  ;;  %1116 = vmatmul.bf16.vlgmr.msra.gmra.mxu1 %v2814_v10  ;;  %v2102_v22 = vld [vmem:[#allocation5 + $0x3c0] sm:$0xf]  ;;  %v2324_v23 = vld [vmem:[#allocation5 + $0x3c4] sm:$0xf0]  ;;  %v2039_v26 = vor.u32 %v2308_v21, %v2038_v20  ;;  %v1966_v29 = vld [vmem:[#allocation5 + $0x2b0] sm:$0xf]  ;;  %v1903_v36 = vor.u32 %v2274_v28, %v1902_v27  ;;  %p2571_p4 = pnand %p2570_p1, %p2754_p7 }
  0x5a   : > { %1164 = vmatpush.bf16.msrb.mxu1 %v1999_v43  ;;  %1130 = vmatmul.bf16.vlgmr.msra.gmra.mxu2 %v2807_v1  ;;  %v2103_v30 = vor.u32 %v2324_v23, %v2102_v22  ;;  %v2290_v31 = vld [vmem:[#allocation5 + $0x2b4] sm:$0xf0]  ;;  %v2030_v32 = vld [vmem:[#allocation5 + $0x330] sm:$0xf]  ;;  %v1894_v39 = vld [vmem:[#allocation5 + $0x220] sm:$0xf] }
  0x5b   : > { %1178 = vmatpush.bf16.msrb.mxu2 %v2063_v44  ;;  %1144 = vmatmul.bf16.vlgmr.msra.gmra.mxu3 %v2817_v17  ;;  %v2306_v33 = vld [vmem:[#allocation5 + $0x334] sm:$0xf0]  ;;  %v2094_v34 = vld [vmem:[#allocation5 + $0x3b0] sm:$0xf]  ;;  %v1967_v37 = vor.u32 %v2290_v31, %v1966_v29  ;;  %v2272_v40 = vld [vmem:[#allocation5 + $0x224] sm:$0xf0]  ;;  %p2572_p8 = pneg %p2571_p4 }
  0x5c   : > { %1192 = vmatpush.bf16.msrb.mxu3 %v2127_v48  ;;  %v2322_v35 = vld [vmem:[#allocation5 + $0x3b4] sm:$0xf0]  ;;  %v2031_v38 = vor.u32 %v2306_v33, %v2030_v32  ;;  %v1958_v41 = vld [vmem:[#allocation5 + $0x2a0] sm:$0xf]  ;;  %v2288_v43 = vld [vmem:[#allocation5 + $0x2a4] sm:$0xf0]  ;;  %v1895_v48 = vor.u32 %v2272_v40, %v1894_v39 }
  0x5d   : > { %1151 = vmatpush.bf16.msrb.mxu0 %v1927_v55  ;;  %v2095_v42 = vor.u32 %v2322_v35, %v2094_v34  ;;  %v2022_v44 = vld [vmem:[#allocation5 + $0x320] sm:$0xf]  ;;  %v2304_v45 = vld [vmem:[#allocation5 + $0x324] sm:$0xf0]  ;;  %v1886_v49 = vld [vmem:[#allocation5 + $0x210] sm:$0xf]  ;;  %v1959_v50 = vor.u32 %v2288_v43, %v1958_v41 }
  0x5e   : > { %1165 = vmatpush.bf16.msrb.mxu1 %v1991_v60  ;;  %v2086_v46 = vld [vmem:[#allocation5 + $0x3a0] sm:$0xf]  ;;  %v2320_v47 = vld [vmem:[#allocation5 + $0x3a4] sm:$0xf0]  ;;  %v2023_v51 = vor.u32 %v2304_v45, %v2022_v44  ;;  %v2270_v52 = vld [vmem:[#allocation5 + $0x214] sm:$0xf0] }
  0x5f   : > { %1179 = vmatpush.bf16.msrb.mxu2 %v2055_v61  ;;  %v1950_v53 = vld [vmem:[#allocation5 + $0x290] sm:$0xf]  ;;  %v2286_v54 = vld [vmem:[#allocation5 + $0x294] sm:$0xf0]  ;;  %v2087_v55 = vor.u32 %v2320_v47, %v2086_v46  ;;  %v1878_v61 = vld [vmem:[#allocation5 + $0x200] sm:$0xf]  ;;  %v1887_v63 = vor.u32 %v2270_v52, %v1886_v49 }
  0x60   : > { %1193 = vmatpush.bf16.msrb.mxu3 %v2119_v2  ;;  %v2014_v56 = vld [vmem:[#allocation5 + $0x310] sm:$0xf]  ;;  %v2302_v57 = vld [vmem:[#allocation5 + $0x314] sm:$0xf0]  ;;  %v2268_v62 = vld [vmem:[#allocation5 + $0x204] sm:$0xf0]  ;;  %v1951_v5 = vor.u32 %v2286_v54, %v1950_v53 }
  0x61   : > { %1152 = vmatpush.bf16.msrb.mxu0 %v1919_v9  ;;  %v2078_v59 = vld [vmem:[#allocation5 + $0x390] sm:$0xf]  ;;  %v2318_v60 = vld [vmem:[#allocation5 + $0x394] sm:$0xf0]  ;;  %v1942_v0 = vld [vmem:[#allocation5 + $0x280] sm:$0xf]  ;;  %v2015_v6 = vor.u32 %v2302_v57, %v2014_v56  ;;  %v1879_v19 = vor.u32 %v2268_v62, %v1878_v61 }
  0x62   : > { %1166 = vmatpush.bf16.msrb.mxu1 %v1983_v12  ;;  %v2284_v2 = vld [vmem:[#allocation5 + $0x284] sm:$0xf0]  ;;  %v2006_v3 = vld [vmem:[#allocation5 + $0x300] sm:$0xf]  ;;  %v2217_v9 = vld [vmem:[#allocation5 + $0x74] sm:$0xf]  ;;  %v2079_v11 = vor.u32 %v2318_v60, %v2078_v59 }
  0x63   : > { %1180 = vmatpush.bf16.msrb.mxu2 %v2047_v13  ;;  %v2300_v4 = vld [vmem:[#allocation5 + $0x304] sm:$0xf0]  ;;  %v2070_v7 = vld [vmem:[#allocation5 + $0x380] sm:$0xf]  ;;  %v1680_v12 = vld [vmem:[#allocation5 + $0x78] sm:$0xf0]  ;;  %v1943_v23 = vor.u32 %v2284_v2, %v1942_v0 }
  0x64   : > { %1194 = vmatpush.bf16.msrb.mxu3 %v2111_v18  ;;  %v2316_v8 = vld [vmem:[#allocation5 + $0x384] sm:$0xf0]  ;;  %v2233_v13 = vld [vmem:[#allocation5 + $0xf4] sm:$0xf]  ;;  %v1744_v14 = vld [vmem:[#allocation5 + $0xf8] sm:$0xf0]  ;;  %v1683_v29 = vor.u32 %v2217_v9, %v1680_v12 }
  0x65   : > { %1153 = vmatpush.bf16.msrb.mxu0 %v1911_v24  ;;  %v2249_v15 = vld [vmem:[#allocation5 + $0x174] sm:$0xf]  ;;  %v1808_v16 = vld [vmem:[#allocation5 + $0x178] sm:$0xf0]  ;;  %v300_v21 = vld [vmem:[%s2787_s8 + $0x20] sm:$0xff]  ;;  %v2007_v24 = vor.u32 %v2300_v4, %v2006_v3  ;;  %v2071_v28 = vor.u32 %v2316_v8, %v2070_v7  ;;  %v1747_v33 = vor.u32 %v2233_v13, %v1744_v14 }
  0x66   : > { %1167 = vmatpush.bf16.msrb.mxu1 %v1975_v25  ;;  %v2265_v18 = vld [vmem:[#allocation5 + $0x1f4] sm:$0xf]  ;;  %v1872_v20 = vld [vmem:[#allocation5 + $0x1f8] sm:$0xf0]  ;;  %v308_v22 = vld [vmem:[%s2787_s8 + $0x60] sm:$0xff]  ;;  %v1811_v34 = vor.u32 %v2249_v15, %v1808_v16 }
  0x67   : > { %1181 = vmatpush.bf16.msrb.mxu2 %v2039_v26  ;;  %v302_v25 = vld [vmem:[%s2787_s8 + $0x30] sm:$0xff]  ;;  %v301_v27 = vld [vmem:[%s2787_s8 + $0x28] sm:$0xff]  ;;  %v303_v31 = vld [vmem:[%s2787_s8 + $0x38] sm:$0xff]  ;;  %v2829_v39 = vpack.c.bf16 %v308_v22, %v300_v21 }
  0x68   : > { %1195 = vmatpush.bf16.msrb.mxu3 %v2103_v30  ;;  %v310_v26 = vld [vmem:[%s2787_s8 + $0x70] sm:$0xff]  ;;  %v309_v30 = vld [vmem:[%s2787_s8 + $0x68] sm:$0xff]  ;;  %v311_v32 = vld [vmem:[%s2787_s8 + $0x78] sm:$0xff]  ;;  %s2573_s8 = scalar_lea.hbm %s2895_s5, 32 }
  0x69   : > { %1154 = vmatpush.bf16.msrb.mxu0 %v1903_v36  ;;  %v2215_v35 = vld [vmem:[#allocation5 + $0x64] sm:$0xf]  ;;  %v1672_v36 = vld [vmem:[#allocation5 + $0x68] sm:$0xf0]  ;;  %v2831_v43 = vpack.c.bf16 %v310_v26, %v302_v25  ;;  %v2833_v44 = vpack.c.bf16 %v309_v30, %v301_v27  ;;  %v2835_v47 = vpack.c.bf16 %v311_v32, %v303_v31  ;;  %v1664_v52 = vld [vmem:[#allocation5 + $0x58] sm:$0xf0]  ;;  %p2575_p9 = scmp.lt.s32.totalorder %s2573_s8, %s2569_s7 }
  0x6a   : > { %1168 = vmatpush.bf16.msrb.mxu1 %v1967_v37  ;;  %v2231_v37 = vld [vmem:[#allocation5 + $0xe4] sm:$0xf]  ;;  %v1736_v40 = vld [vmem:[#allocation5 + $0xe8] sm:$0xf0]  ;;  %v2229_v53 = vld [vmem:[#allocation5 + $0xd4] sm:$0xf] }
  0x6b   : > { %1182 = vmatpush.bf16.msrb.mxu2 %v2031_v38  ;;  %v1875_v38 = vor.u32 %v2265_v18, %v1872_v20  ;;  %v2247_v41 = vld [vmem:[#allocation5 + $0x164] sm:$0xf]  ;;  %v1864_v46 = vld [vmem:[#allocation5 + $0x1e8] sm:$0xf0]  ;;  %v1739_v49 = vor.u32 %v2231_v37, %v1736_v40  ;;  %v2245_v56 = vld [vmem:[#allocation5 + $0x154] sm:$0xf]  ;;  %p2576_p2 = por %p2575_p9, %p2574_p11 }
  0x6c   : > { %1196 = vmatpush.bf16.msrb.mxu3 %v2095_v42  ;;  %v1800_v42 = vld [vmem:[#allocation5 + $0x168] sm:$0xf0]  ;;  %v2263_v45 = vld [vmem:[#allocation5 + $0x1e4] sm:$0xf]  ;;  %v1792_v57 = vld [vmem:[#allocation5 + $0x158] sm:$0xf0] }
  0x6d   : > { %1155 = vmatpush.bf16.msrb.mxu0 %v1895_v48  ;;  %v1675_v48 = vor.u32 %v2215_v35, %v1672_v36  ;;  %v1867_v54 = vor.u32 %v2263_v45, %v1864_v46  ;;  %v2261_v59 = vld [vmem:[#allocation5 + $0x1d4] sm:$0xf]  ;;  %v1856_v60 = vld [vmem:[#allocation5 + $0x1d8] sm:$0xf0]  ;;  %v2211_v0 = vld [vmem:[#allocation5 + $0x44] sm:$0xf]  ;;  %p2577_p10 = pnand %p2576_p2, %p2572_p8 }
  0x6e   : > { %1169 = vmatpush.bf16.msrb.mxu1 %v1959_v50  ;;  %v1803_v50 = vor.u32 %v2247_v41, %v1800_v42  ;;  %v1656_v2 = vld [vmem:[#allocation5 + $0x48] sm:$0xf0]  ;;  %v2227_v3 = vld [vmem:[#allocation5 + $0xc4] sm:$0xf]  ;;  %v1859_v4 = vor.u32 %v2261_v59, %v1856_v60  ;;  %v2209_v14 = vld [vmem:[#allocation5 + $0x34] sm:$0xf] }
  0x6f   : > { %1183 = vmatpush.bf16.msrb.mxu2 %v2023_v51  ;;  %v2213_v51 = vld [vmem:[#allocation5 + $0x54] sm:$0xf]  ;;  %v1784_v7 = vld [vmem:[#allocation5 + $0x148] sm:$0xf0]  ;;  %v2259_v8 = vld [vmem:[#allocation5 + $0x1c4] sm:$0xf] }
  0x70   : > { %1197 = vmatpush.bf16.msrb.mxu3 %v2087_v55  ;;  %v1728_v55 = vld [vmem:[#allocation5 + $0xd8] sm:$0xf0]  ;;  %v1667_v61 = vor.u32 %v2213_v51, %v1664_v52  ;;  %v1848_v9 = vld [vmem:[#allocation5 + $0x1c8] sm:$0xf0]  ;;  %v2225_v16 = vld [vmem:[#allocation5 + $0xb4] sm:$0xf] }
  0x71   : > { %1156 = vmatpush.bf16.msrb.mxu0 %v1887_v63  ;;  %v1731_v62 = vor.u32 %v2229_v53, %v1728_v55  ;;  %v1795_v63 = vor.u32 %v2245_v56, %v1792_v57  ;;  %v1648_v15 = vld [vmem:[#allocation5 + $0x38] sm:$0xf0]  ;;  %v1851_v18 = vor.u32 %v2259_v8, %v1848_v9  ;;  %v2241_v20 = vld [vmem:[#allocation5 + $0x134] sm:$0xf]  ;;  %v2207_v27 = vld [vmem:[#allocation5 + $0x24] sm:$0xf] }
  0x72   : > { %1170 = vmatpush.bf16.msrb.mxu1 %v1951_v5  ;;  %v1720_v5 = vld [vmem:[#allocation5 + $0xc8] sm:$0xf0]  ;;  %v1776_v21 = vld [vmem:[#allocation5 + $0x138] sm:$0xf0]  ;;  %v2257_v22 = vld [vmem:[#allocation5 + $0x1b4] sm:$0xf] }
  0x73   : > { %1184 = vmatpush.bf16.msrb.mxu2 %v2015_v6  ;;  %v2243_v6 = vld [vmem:[#allocation5 + $0x144] sm:$0xf]  ;;  %v1723_v12 = vor.u32 %v2227_v3, %v1720_v5  ;;  %v1779_v26 = vor.u32 %v2241_v20, %v1776_v21  ;;  %v1704_v31 = vld [vmem:[#allocation5 + $0xa8] sm:$0xf0]  ;;  %v2205_v40 = vld [vmem:[#allocation5 + $0x14] sm:$0xf] }
  0x74   : > { %1198 = vmatpush.bf16.msrb.mxu3 %v2079_v11  ;;  %v1659_v11 = vor.u32 %v2211_v0, %v1656_v2  ;;  %v1787_v13 = vor.u32 %v2243_v6, %v1784_v7  ;;  %v2239_v32 = vld [vmem:[#allocation5 + $0x124] sm:$0xf]  ;;  %v1832_v35 = vld [vmem:[#allocation5 + $0x1a8] sm:$0xf0]  ;;  %v1632_v41 = vld [vmem:[#allocation5 + $0x18] sm:$0xf0] }
  0x75   : > { %1157 = vmatpush.bf16.msrb.mxu0 %v1879_v19  ;;  %v1712_v19 = vld [vmem:[#allocation5 + $0xb8] sm:$0xf0]  ;;  %v2221_v42 = vld [vmem:[#allocation5 + $0x94] sm:$0xf]  ;;  %v1635_v52 = vor.u32 %v2205_v40, %v1632_v41  ;;  %v2203_v53 = vld [vmem:[#allocation5 + $0x4] sm:$0xf] }
  0x76   : > { %1171 = vmatpush.bf16.msrb.mxu1 %v1943_v23  ;;  %v1840_v23 = vld [vmem:[#allocation5 + $0x1b8] sm:$0xf0]  ;;  %v1715_v25 = vor.u32 %v2225_v16, %v1712_v19  ;;  %v2219_v57 = vld [vmem:[#allocation5 + $0x84] sm:$0xf]  ;;  %v1688_v59 = vld [vmem:[#allocation5 + $0x88] sm:$0xf0] }
  0x77   : > { %1185 = vmatpush.bf16.msrb.mxu2 %v2007_v24  ;;  %v1651_v24 = vor.u32 %v2209_v14, %v1648_v15  ;;  %v1843_v30 = vor.u32 %v2257_v22, %v1840_v23  ;;  %v1696_v46 = vld [vmem:[#allocation5 + $0x98] sm:$0xf0]  ;;  %v2235_v60 = vld [vmem:[#allocation5 + $0x104] sm:$0xf]  ;;  %v1816_v0 = vld [vmem:[#allocation5 + $0x188] sm:$0xf0]  ;;  %v1691_v9 = vor.u32 %v2219_v57, %v1688_v59 }
  0x78   : > { %1199 = vmatpush.bf16.msrb.mxu3 %v2071_v28  ;;  %1158 = vmatmul.bf16.vlgmr.msrb.gmra.mxu0 %v2829_v39  ;;  %v1640_v28 = vld [vmem:[#allocation5 + $0x28] sm:$0xf0]  ;;  %v1824_v51 = vld [vmem:[#allocation5 + $0x198] sm:$0xf0]  ;;  %v1699_v55 = vor.u32 %v2221_v42, %v1696_v46  ;;  %v2281_v2 = vld [vmem:[#allocation5 + $0x274] sm:$0xf] }
  0x79   : > { %1206 = vmatpush.bf16.msra.mxu0 %v1683_v29  ;;  %1172 = vmatmul.bf16.vlgmr.msrb.gmra.mxu1 %v2833_v44  ;;  %v2223_v29 = vld [vmem:[#allocation5 + $0xa4] sm:$0xf]  ;;  %v1643_v36 = vor.u32 %v2207_v27, %v1640_v28  ;;  %v1936_v3 = vld [vmem:[#allocation5 + $0x278] sm:$0xf0]  ;;  %v2313_v7 = vld [vmem:[#allocation5 + $0x374] sm:$0xf] }
  0x7a   : > { %1220 = vmatpush.bf16.msra.mxu1 %v1747_v33  ;;  %1186 = vmatmul.bf16.vlgmr.msrb.gmra.mxu2 %v2831_v43  ;;  %v1768_v33 = vld [vmem:[#allocation5 + $0x128] sm:$0xf0]  ;;  %v1707_v37 = vor.u32 %v2223_v29, %v1704_v31  ;;  %v2000_v6 = vld [vmem:[#allocation5 + $0x2f8] sm:$0xf0]  ;;  %v1939_v15 = vor.u32 %v2281_v2, %v1936_v3  ;;  %v2279_v16 = vld [vmem:[#allocation5 + $0x264] sm:$0xf] }
  0x7b   : > { %1234 = vmatpush.bf16.msra.mxu2 %v1811_v34  ;;  %1200 = vmatmul.bf16.vlgmr.msrb.gmra.mxu3 %v2835_v47  ;;  %v2255_v34 = vld [vmem:[#allocation5 + $0x1a4] sm:$0xf]  ;;  %v2064_v8 = vld [vmem:[#allocation5 + $0x378] sm:$0xf0]  ;;  %v1928_v20 = vld [vmem:[#allocation5 + $0x268] sm:$0xf0] }
  0x7c   : > { %1248 = vmatpush.bf16.msra.mxu3 %v1875_v38  ;;  %v1771_v38 = vor.u32 %v2239_v32, %v1768_v33  ;;  %v1835_v45 = vor.u32 %v2255_v34, %v1832_v35  ;;  %v2067_v19 = vor.u32 %v2313_v7, %v2064_v8  ;;  %v2295_v21 = vld [vmem:[#allocation5 + $0x2e4] sm:$0xf]  ;;  %v1992_v23 = vld [vmem:[#allocation5 + $0x2e8] sm:$0xf0]  ;;  %v1931_v28 = vor.u32 %v2279_v16, %v1928_v20  ;;  %v2277_v31 = vld [vmem:[#allocation5 + $0x254] sm:$0xf] }
  0x7d   : > { %1207 = vmatpush.bf16.msra.mxu0 %v1675_v48  ;;  %v2237_v48 = vld [vmem:[#allocation5 + $0x114] sm:$0xf]  ;;  %v2120_v27 = vld [vmem:[#allocation5 + $0x3e8] sm:$0xf0]  ;;  %v1995_v29 = vor.u32 %v2295_v21, %v1992_v23  ;;  %v1920_v32 = vld [vmem:[#allocation5 + $0x258] sm:$0xf0] }
  0x7e   : > { %1221 = vmatpush.bf16.msra.mxu1 %v1739_v49  ;;  %v1760_v49 = vld [vmem:[#allocation5 + $0x118] sm:$0xf0]  ;;  %v2293_v33 = vld [vmem:[#allocation5 + $0x2d4] sm:$0xf]  ;;  %v1923_v41 = vor.u32 %v2277_v31, %v1920_v32  ;;  %v2275_v46 = vld [vmem:[#allocation5 + $0x244] sm:$0xf] }
  0x7f   : > { %1235 = vmatpush.bf16.msra.mxu2 %v1803_v50  ;;  %v2253_v50 = vld [vmem:[#allocation5 + $0x194] sm:$0xf]  ;;  %v1763_v56 = vor.u32 %v2237_v48, %v1760_v49  ;;  %v1984_v35 = vld [vmem:[#allocation5 + $0x2d8] sm:$0xf0]  ;;  %v1912_v48 = vld [vmem:[#allocation5 + $0x248] sm:$0xf0] }
  0x80   : > { %1249 = vmatpush.bf16.msra.mxu3 %v1867_v54  ;;  %v1624_v54 = vld [vmem:[#allocation5 + $0x8] sm:$0xf0]  ;;  %v2112_v40 = vld [vmem:[#allocation5 + $0x3d8] sm:$0xf0]  ;;  %v1987_v42 = vor.u32 %v2293_v33, %v1984_v35  ;;  %v2289_v57 = vld [vmem:[#allocation5 + $0x2b4] sm:$0xf] }
  0x81   : > { %1208 = vmatpush.bf16.msra.mxu0 %v1667_v61  ;;  %v1827_v61 = vor.u32 %v2253_v50, %v1824_v51  ;;  %v1627_v5 = vor.u32 %v2203_v53, %v1624_v54  ;;  %v1976_v50 = vld [vmem:[#allocation5 + $0x2c8] sm:$0xf0]  ;;  %v2307_v51 = vld [vmem:[#allocation5 + $0x344] sm:$0xf]  ;;  %v1888_v20 = vld [vmem:[#allocation5 + $0x218] sm:$0xf0] }
  0x82   : > { %1222 = vmatpush.bf16.msra.mxu1 %v1731_v62  ;;  %v1752_v62 = vld [vmem:[#allocation5 + $0x108] sm:$0xf0]  ;;  %v2323_v53 = vld [vmem:[#allocation5 + $0x3c4] sm:$0xf]  ;;  %v2285_v21 = vld [vmem:[#allocation5 + $0x294] sm:$0xf] }
  0x83   : > { %1236 = vmatpush.bf16.msra.mxu2 %v1795_v63  ;;  %v2251_v63 = vld [vmem:[#allocation5 + $0x184] sm:$0xf]  ;;  %v1952_v23 = vld [vmem:[#allocation5 + $0x298] sm:$0xf0]  ;;  %v1880_v32 = vld [vmem:[#allocation5 + $0x208] sm:$0xf0] }
  0x84   : > { %1250 = vmatpush.bf16.msra.mxu3 %v1859_v4  ;;  %v2297_v4 = vld [vmem:[#allocation5 + $0x2f4] sm:$0xf]  ;;  %v1819_v14 = vor.u32 %v2251_v63, %v1816_v0  ;;  %v2096_v0 = vld [vmem:[#allocation5 + $0x3b8] sm:$0xf0]  ;;  %v2287_v7 = vld [vmem:[#allocation5 + $0x2a4] sm:$0xf] }
  0x85   : > { %1209 = vmatpush.bf16.msra.mxu0 %v1659_v11  ;;  %v1755_v11 = vor.u32 %v2235_v60, %v1752_v62  ;;  %v1968_v60 = vld [vmem:[#allocation5 + $0x2b8] sm:$0xf0]  ;;  %v2321_v63 = vld [vmem:[#allocation5 + $0x3b4] sm:$0xf]  ;;  %v2267_v31 = vld [vmem:[#allocation5 + $0x204] sm:$0xf] }
  0x86   : > { %1223 = vmatpush.bf16.msra.mxu1 %v1723_v12  ;;  %v2329_v12 = vld [vmem:[#allocation5 + $0x3f4] sm:$0xf]  ;;  %v2032_v62 = vld [vmem:[#allocation5 + $0x338] sm:$0xf0]  ;;  %v1971_v3 = vor.u32 %v2289_v57, %v1968_v60  ;;  %v2099_v8 = vor.u32 %v2321_v63, %v2096_v0  ;;  %v2283_v33 = vld [vmem:[#allocation5 + $0x284] sm:$0xf] }
  0x87   : > { %1237 = vmatpush.bf16.msra.mxu2 %v1787_v13  ;;  %v2128_v13 = vld [vmem:[#allocation5 + $0x3f8] sm:$0xf0]  ;;  %v1944_v35 = vld [vmem:[#allocation5 + $0x288] sm:$0xf0] }
  0x88   : > { %1251 = vmatpush.bf16.msra.mxu3 %v1851_v18  ;;  %v2003_v18 = vor.u32 %v2297_v4, %v2000_v6  ;;  %v2131_v22 = vor.u32 %v2329_v12, %v2128_v13  ;;  %v1896_v6 = vld [vmem:[#allocation5 + $0x228] sm:$0xf0]  ;;  %v2319_v13 = vld [vmem:[#allocation5 + $0x3a4] sm:$0xf] }
  0x89   : > { %1210 = vmatpush.bf16.msra.mxu0 %v1651_v24  ;;  %v2311_v24 = vld [vmem:[#allocation5 + $0x364] sm:$0xf]  ;;  %v2024_v12 = vld [vmem:[#allocation5 + $0x328] sm:$0xf0] }
  0x8a   : > { %1224 = vmatpush.bf16.msra.mxu1 %v1715_v25  ;;  %v2056_v25 = vld [vmem:[#allocation5 + $0x368] sm:$0xf0] }
  0x8b   : > { %1238 = vmatpush.bf16.msra.mxu2 %v1779_v26  ;;  %v2327_v26 = vld [vmem:[#allocation5 + $0x3e4] sm:$0xf] }
  0x8c   : > { %1252 = vmatpush.bf16.msra.mxu3 %v1843_v30  ;;  %v2059_v30 = vor.u32 %v2311_v24, %v2056_v25  ;;  %v2123_v34 = vor.u32 %v2327_v26, %v2120_v27  ;;  %v2301_v24 = vld [vmem:[#allocation5 + $0x314] sm:$0xf]  ;;  %v2016_v25 = vld [vmem:[#allocation5 + $0x318] sm:$0xf0] }
  0x8d   : > { %1211 = vmatpush.bf16.msra.mxu0 %v1643_v36  ;;  %v2309_v36 = vld [vmem:[#allocation5 + $0x354] sm:$0xf]  ;;  %v2080_v27 = vld [vmem:[#allocation5 + $0x398] sm:$0xf0] }
  0x8e   : > { %1225 = vmatpush.bf16.msra.mxu1 %v1707_v37  ;;  %v2048_v37 = vld [vmem:[#allocation5 + $0x358] sm:$0xf0]  ;;  %v2317_v26 = vld [vmem:[#allocation5 + $0x394] sm:$0xf] }
  0x8f   : > { %1239 = vmatpush.bf16.msra.mxu2 %v1771_v38  ;;  %v2325_v38 = vld [vmem:[#allocation5 + $0x3d4] sm:$0xf] }
  0x90   : > { %1253 = vmatpush.bf16.msra.mxu3 %v1835_v45  ;;  %v2051_v45 = vor.u32 %v2309_v36, %v2048_v37  ;;  %v2115_v49 = vor.u32 %v2325_v38, %v2112_v40  ;;  %v2299_v36 = vld [vmem:[#allocation5 + $0x304] sm:$0xf]  ;;  %v2008_v37 = vld [vmem:[#allocation5 + $0x308] sm:$0xf0] }
  0x91   : > { %1212 = vmatpush.bf16.msra.mxu0 %v1635_v52  ;;  %v2040_v52 = vld [vmem:[#allocation5 + $0x348] sm:$0xf0]  ;;  %v2315_v38 = vld [vmem:[#allocation5 + $0x384] sm:$0xf] }
  0x92   : > { %1226 = vmatpush.bf16.msra.mxu1 %v1699_v55  ;;  %v2273_v55 = vld [vmem:[#allocation5 + $0x234] sm:$0xf]  ;;  %v2072_v40 = vld [vmem:[#allocation5 + $0x388] sm:$0xf0] }
  0x93   : > { %1240 = vmatpush.bf16.msra.mxu2 %v1763_v56  ;;  %v1904_v56 = vld [vmem:[#allocation5 + $0x238] sm:$0xf0] }
  0x94   : > { %1254 = vmatpush.bf16.msra.mxu3 %v1827_v61  ;;  %v2305_v61 = vld [vmem:[#allocation5 + $0x334] sm:$0xf]  ;;  %v1907_v2 = vor.u32 %v2273_v55, %v1904_v56 }
  0x95   : > { %1213 = vmatpush.bf16.msra.mxu0 %v1627_v5  ;;  %v2035_v4 = vor.u32 %v2305_v61, %v2032_v62  ;;  %v2271_v5 = vld [vmem:[#allocation5 + $0x224] sm:$0xf] }
  0x96   : > { %1227 = vmatpush.bf16.msra.mxu1 %v1691_v9  ;;  %v1960_v9 = vld [vmem:[#allocation5 + $0x2a8] sm:$0xf0] }
  0x97   : > { %1241 = vmatpush.bf16.msra.mxu2 %v1755_v11  ;;  %v2303_v11 = vld [vmem:[#allocation5 + $0x324] sm:$0xf]  ;;  %v1963_v16 = vor.u32 %v2287_v7, %v1960_v9 }
  0x98   : > { %1255 = vmatpush.bf16.msra.mxu3 %v1819_v14  ;;  %1214 = vmatmul.bf16.vlgmr.msra.gmra.mxu0 %v2804_v58  ;;  %v2104_v58 = vld [vmem:[#allocation5 + $0x3c8] sm:$0xf0] }
  0x99   : > { %1262 = vmatpush.bf16.msrb.mxu0 %v1939_v15  ;;  %1228 = vmatmul.bf16.vlgmr.msra.gmra.mxu1 %v2814_v10  ;;  %v2043_v10 = vor.u32 %v2307_v51, %v2040_v52  ;;  %v2107_v59 = vor.u32 %v2323_v53, %v2104_v58  ;;  %v2088_v14 = vld [vmem:[#allocation5 + $0x3a8] sm:$0xf0]  ;;  %v1899_v15 = vor.u32 %v2271_v5, %v1896_v6  ;;  %v2334_v51 = vld [vmem:[#allocation8 + $0x18] sm:$0xff]  ;;  %v2333_v53 = vld [vmem:[#allocation8 + $0x10] sm:$0xff] }
  0x9a   : > { %1276 = vmatpush.bf16.msrb.mxu1 %v2003_v18  ;;  %1242 = vmatmul.bf16.vlgmr.msra.gmra.mxu2 %v2807_v1  ;;  %v2291_v1 = vld [vmem:[#allocation5 + $0x2c4] sm:$0xf]  ;;  %v2027_v18 = vor.u32 %v2303_v11, %v2024_v12  ;;  %v2849_v58 = vld [vmem:[#allocation7] sm:$0x3] }
  0x9b   : > { %1290 = vmatpush.bf16.msrb.mxu2 %v2067_v19  ;;  %1256 = vmatmul.bf16.vlgmr.msra.gmra.mxu3 %v2817_v17  ;;  %v1915_v17 = vor.u32 %v2275_v46, %v1912_v48  ;;  %v1979_v54 = vor.u32 %v2291_v1, %v1976_v50  ;;  %v2269_v19 = vld [vmem:[#allocation5 + $0x214] sm:$0xf]  ;;  %v2075_v46 = vor.u32 %v2315_v38, %v2072_v40  ;;  %v2338_v48 = vld [vmem:[#allocation8 + $0x38] sm:$0xff]  ;;  %v2335_v50 = vld [vmem:[#allocation8 + $0x20] sm:$0xff] }
  0x9c   : > { %1304 = vmatpush.bf16.msrb.mxu3 %v2131_v22  ;;  %v2091_v22 = vor.u32 %v2319_v13, %v2088_v14  ;;  %v2337_v1 = vld [vmem:[#allocation8 + $0x30] sm:$0xff] }
  0x9d   : > { %1263 = vmatpush.bf16.msrb.mxu0 %v1931_v28  ;;  %v1891_v28 = vor.u32 %v2269_v19, %v1888_v20 }
  0x9e   : > { %1277 = vmatpush.bf16.msrb.mxu1 %v1995_v29  ;;  %v1955_v29 = vor.u32 %v2285_v21, %v1952_v23 }
  0x9f   : > { %1291 = vmatpush.bf16.msrb.mxu2 %v2059_v30  ;;  %v2019_v30 = vor.u32 %v2301_v24, %v2016_v25 }
  0xa0   : > { %1305 = vmatpush.bf16.msrb.mxu3 %v2123_v34  ;;  %v2083_v34 = vor.u32 %v2317_v26, %v2080_v27  ;;  %v2344_v27 = vld [vmem:[#allocation8 + $0x68] sm:$0xff] }
  0xa1   : > { %1264 = vmatpush.bf16.msrb.mxu0 %v1923_v41  ;;  %v1883_v41 = vor.u32 %v2267_v31, %v1880_v32  ;;  %v2340_v32 = vld [vmem:[#allocation8 + $0x48] sm:$0xff] }
  0xa2   : > { %1278 = vmatpush.bf16.msrb.mxu1 %v1987_v42  ;;  %v1947_v42 = vor.u32 %v2283_v33, %v1944_v35  ;;  %v2339_v35 = vld [vmem:[#allocation8 + $0x40] sm:$0xff] }
  0xa3   : > { %1292 = vmatpush.bf16.msrb.mxu2 %v2051_v45  ;;  %v2011_v45 = vor.u32 %v2299_v36, %v2008_v37 }
  0xa4   : > { %1306 = vmatpush.bf16.msrb.mxu3 %v2115_v49  ;;  %v2336_v49 = vld [vmem:[#allocation8 + $0x28] sm:$0xff] }
  0xa5   : > { %1265 = vmatpush.bf16.msrb.mxu0 %v1915_v17 }
  0xa6   : > { %1279 = vmatpush.bf16.msrb.mxu1 %v1979_v54 }
  0xa7   : > { %1293 = vmatpush.bf16.msrb.mxu2 %v2043_v10  ;;  %v2331_v10 = vld [vmem:[#allocation8] sm:$0xff] }
  0xa8   : > { %1307 = vmatpush.bf16.msrb.mxu3 %v2107_v59 }
  0xa9   : > { %1266 = vmatpush.bf16.msrb.mxu0 %v1907_v2 }
  0xaa   : > { %1280 = vmatpush.bf16.msrb.mxu1 %v1971_v3 }
  0xab   : > { %1294 = vmatpush.bf16.msrb.mxu2 %v2035_v4 }
  0xac   : > { %1308 = vmatpush.bf16.msrb.mxu3 %v2099_v8 }
  0xad   : > { %1267 = vmatpush.bf16.msrb.mxu0 %v1899_v15 }
  0xae   : > { %1281 = vmatpush.bf16.msrb.mxu1 %v1963_v16 }
  0xaf   : > { %1295 = vmatpush.bf16.msrb.mxu2 %v2027_v18  ;;  %v2346_v18 = vld [vmem:[#allocation8 + $0x78] sm:$0xff] }
  0xb0   : > { %1309 = vmatpush.bf16.msrb.mxu3 %v2091_v22  ;;  %v2345_v22 = vld [vmem:[#allocation8 + $0x70] sm:$0xff] }
  0xb1   : > { %1268 = vmatpush.bf16.msrb.mxu0 %v1891_v28  ;;  %v2343_v28 = vld [vmem:[#allocation8 + $0x60] sm:$0xff] }
  0xb2   : > { %1282 = vmatpush.bf16.msrb.mxu1 %v1955_v29  ;;  %v2342_v29 = vld [vmem:[#allocation8 + $0x58] sm:$0xff] }
  0xb3   : > { %1296 = vmatpush.bf16.msrb.mxu2 %v2019_v30  ;;  %v2341_v30 = vld [vmem:[#allocation8 + $0x50] sm:$0xff] }
  0xb4   : > { %1310 = vmatpush.bf16.msrb.mxu3 %v2083_v34  ;;  %v451_v34 = vperm.slane %v2849_v58, 1 }
  0xb5   : > { %1269 = vmatpush.bf16.msrb.mxu0 %v1883_v41 }
  0xb6   : > { %1283 = vmatpush.bf16.msrb.mxu1 %v1947_v42 }
  0xb7   : > { %1297 = vmatpush.bf16.msrb.mxu2 %v2011_v45 }
  0xb8   : > { %1311 = vmatpush.bf16.msrb.mxu3 %v2075_v46  ;;  %1270 = vmatmul.bf16.vlgmr.msrb.gmra.mxu0 %v2829_v39 }
  0xb9   : > { %1284 = vmatmul.bf16.vlgmr.msrb.gmra.mxu1 %v2833_v44  ;;  %1456 = vmatpush.bf16.msra.mxu0 %v2338_v48  ;;  %v2332_v44 = vld [vmem:[#allocation8 + $0x8] sm:$0xff] }
  0xba   : > { %1298 = vmatmul.bf16.vlgmr.msrb.gmra.mxu2 %v2831_v43  ;;  %v450_v43 = vperm.slane %v2849_v58, 0  ;;  %1470 = vmatpush.bf16.msra.mxu1 %v2346_v18 }
  0xbb   : > { %1312 = vmatmul.bf16.vlgmr.msrb.gmra.mxu3 %v2835_v47 }
  0xbd   : > { %1457 = vmatpush.bf16.msra.mxu0 %v2337_v1 }
  0xbe   : > { %1471 = vmatpush.bf16.msra.mxu1 %v2345_v22 }
  0xc1   : > { %1458 = vmatpush.bf16.msra.mxu0 %v2336_v49 }
  0xc2   : > { %1472 = vmatpush.bf16.msra.mxu1 %v2344_v27 }
  0xc5   : > { %1459 = vmatpush.bf16.msra.mxu0 %v2335_v50 }
  0xc6   : > { %1473 = vmatpush.bf16.msra.mxu1 %v2343_v28 }
  0xc9   : > { %1460 = vmatpush.bf16.msra.mxu0 %v2334_v51 }
  0xca   : > { %1474 = vmatpush.bf16.msra.mxu1 %v2342_v29 }
  0xcd   : > { %1461 = vmatpush.bf16.msra.mxu0 %v2333_v53 }
  0xce   : > { %1475 = vmatpush.bf16.msra.mxu1 %v2341_v30 }
  0xd1   : > { %1462 = vmatpush.bf16.msra.mxu0 %v2332_v44 }
  0xd2   : > { %1476 = vmatpush.bf16.msra.mxu1 %v2340_v32 }
  0xd5   : > { %v1103_v52 = vpop.f32.mrf.mxu0  ;;  %1463 = vmatpush.bf16.msra.mxu0 %v2331_v10 }
  0xd6   : > { %v1117_v39 = vpop.f32.mrf.mxu1  ;;  %v1104_v17 = vadd.f32 %v1103_v52, %v450_v43  ;;  %1477 = vmatpush.bf16.msra.mxu1 %v2339_v35 }
  0xd8   : > { %v1118_v57 = vadd.f32 %v1117_v39, %v1104_v17 }
  0xdd   : > { %v1131_v47 = vpop.f32.mrf.mxu2  ;;  %v1105_v55 = vpop.f32.mrf.mxu0 }
  0xde   : > { %v1145_v54 = vpop.f32.mrf.mxu3  ;;  %v1119_v56 = vpop.f32.mrf.mxu1  ;;  %v1106_v59 = vadd.f32 %v1105_v55, %v450_v43  ;;  %v1132_v60 = vadd.f32 %v1131_v47, %v1118_v57 }
  0xe0   : > { %v1120_v62 = vadd.f32 %v1119_v56, %v1106_v59  ;;  %v1146_v0 = vadd.f32 %v1145_v54, %v1132_v60 }
  0xe5   : > { %v1133_v61 = vpop.f32.mrf.mxu2 }
  0xe6   : > { %v1147_v63 = vpop.f32.mrf.mxu3  ;;  %v1134_v4 = vadd.f32 %v1133_v61, %v1120_v62 }
  0xe8   : > { %v1148_v6 = vadd.f32 %v1147_v63, %v1134_v4  ;;  %v2432_v4 = vld [vmem:[%s2894_s4] ss:$0 sm:$0xff] }
  0xf5   : > { %v1159_v2 = vpop.f32.mrf.mxu0 }
  0xf6   : > { %v1173_v3 = vpop.f32.mrf.mxu1  ;;  %v1160_v5 = vadd.f32 %v1159_v2, %v1146_v0 }
  0xf8   : > { %v1174_v8 = vadd.f32 %v1173_v3, %v1160_v5 }
  0xfd   : > { %v1187_v7 = vpop.f32.mrf.mxu2  ;;  %v1161_v9 = vpop.f32.mrf.mxu0 }
  0xfe   : > { %v1201_v11 = vpop.f32.mrf.mxu3  ;;  %v1162_v12 = vadd.f32 %v1161_v9, %v1148_v6  ;;  %v1175_v13 = vpop.f32.mrf.mxu1  ;;  %v1188_v14 = vadd.f32 %v1187_v7, %v1174_v8 }
 0x100   : > { %v1176_v15 = vadd.f32 %v1175_v13, %v1162_v12  ;;  %v1202_v19 = vadd.f32 %v1201_v11, %v1188_v14 }
 0x102   : > { %v1318_v24 = vmax.f32 %v1202_v19, 0.0 }
 0x105   : > { %v1189_v16 = vpop.f32.mrf.mxu2 }
 0x106   : > { %v1190_v20 = vadd.f32 %v1189_v16, %v1176_v15  ;;  %v1203_v21 = vpop.f32.mrf.mxu3 }
 0x108   : > { %v1204_v23 = vadd.f32 %v1203_v21, %v1190_v20 }
 0x10a   : > { %v1320_v25 = vmax.f32 %v1204_v23, 0.0 }
 0x10c   : > { %v1322_v26 = vpack.c.bf16 %v1320_v25, %v1318_v24 }
 0x10e   : > { %1464 = vmatmul.bf16.vlgmr.msra.gmra.mxu0 %v1322_v26 }
 0x115   : > { %v1215_v31 = vpop.f32.mrf.mxu0 }
 0x116   : > { %v1229_v33 = vpop.f32.mrf.mxu1  ;;  %v1216_v38 = vadd.f32 %v1215_v31, %v451_v34 }
 0x118   : > { %v1230_v42 = vadd.f32 %v1229_v33, %v1216_v38 }
 0x11d   : > { %v1243_v36 = vpop.f32.mrf.mxu2  ;;  %v1217_v40 = vpop.f32.mrf.mxu0 }
 0x11e   : > { %v1257_v37 = vpop.f32.mrf.mxu3  ;;  %v1231_v41 = vpop.f32.mrf.mxu1  ;;  %v1218_v45 = vadd.f32 %v1217_v40, %v451_v34  ;;  %v1244_v48 = vadd.f32 %v1243_v36, %v1230_v42 }
 0x120   : > { %v1232_v1 = vadd.f32 %v1231_v41, %v1218_v45  ;;  %v1258_v52 = vadd.f32 %v1257_v37, %v1244_v48 }
 0x125   : > { %v1245_v46 = vpop.f32.mrf.mxu2 }
 0x126   : > { %v1259_v49 = vpop.f32.mrf.mxu3  ;;  %v1246_v53 = vadd.f32 %v1245_v46, %v1232_v1 }
 0x128   : > { %v1260_v58 = vadd.f32 %v1259_v49, %v1246_v53 }
 0x135   : > { %v1271_v50 = vpop.f32.mrf.mxu0 }
 0x136   : > { %v1285_v51 = vpop.f32.mrf.mxu1  ;;  %v1272_v39 = vadd.f32 %v1271_v50, %v1258_v52 }
 0x138   : > { %v1286_v17 = vadd.f32 %v1285_v51, %v1272_v39 }
 0x13d   : > { %v1299_v43 = vpop.f32.mrf.mxu2  ;;  %v1273_v47 = vpop.f32.mrf.mxu0 }
 0x13e   : > { %v1313_v44 = vpop.f32.mrf.mxu3  ;;  %v1274_v54 = vadd.f32 %v1273_v47, %v1260_v58  ;;  %v1300_v10 = vadd.f32 %v1299_v43, %v1286_v17  ;;  %v1287_v55 = vpop.f32.mrf.mxu1 }
 0x140   : > { %v1288_v56 = vadd.f32 %v1287_v55, %v1274_v54  ;;  %v1314_v59 = vadd.f32 %v1313_v44, %v1300_v10 }
 0x142   : > { %v1319_v63 = vmax.f32 %v1314_v59, 0.0 }
 0x145   : > { %v1301_v57 = vpop.f32.mrf.mxu2 }
 0x146   : > { %v1302_v60 = vadd.f32 %v1301_v57, %v1288_v56  ;;  %v1315_v61 = vpop.f32.mrf.mxu3 }
 0x148   : > { %v1316_v62 = vadd.f32 %v1315_v61, %v1302_v60 }
 0x14a   : > { %v1321_v0 = vmax.f32 %v1316_v62, 0.0 }
 0x14c   : > { %v1323_v2 = vpack.c.bf16 %v1321_v0, %v1319_v63 }
 0x14e   : > { %1478 = vmatmul.bf16.vlgmr.msra.gmra.mxu1 %v1323_v2 }
 0x18b   : > { %v1465_v3 = vpop.f32.mrf.mxu0 }
 0x18c   : > { %v1466_v5 = vadd.f32 %v2432_v4, %v1465_v3 }
 0x193   : > { %v1467_v8 = vpop.f32.mrf.mxu0 }
 0x194   : > { %v1468_v9 = vadd.f32 %v2432_v4, %v1467_v8 }
 0x1cb   : > { %v1479_v6 = vpop.f32.mrf.mxu1 }
 0x1cc   : > { %v1480_v7 = vadd.f32 %v1479_v6, %v1466_v5 }
 0x1ce   : > { %1484 = vst [vmem:[%s293_s12] sm:$0xff] %v1480_v7 }
 0x1d3   : > { %v1481_v11 = vpop.f32.mrf.mxu1 }
 0x1d4   : > { %v1482_v12 = vadd.f32 %v1481_v11, %v1468_v9 }
 0x1d6   : > { %1485 = vst [vmem:[%s293_s12 + $0x8] sm:$0xff] %v1482_v12 }
 0x1d7   : > { %2580 = shalt.err (!%p2577_p10)
}
 0x1d8   : > { %s2637_s17 = smov 128   ;;  %s2638_s27 = smov 8  }
 0x1d9   : > { %2362 = dma.vmem_to_hbm [thread:$0]  (%p2754_p7), %s1500_s13, 256, %s1502_s14, %s1487_s15, %s2637_s17, %s2637_s17, %s2638_s27  }
 0x1da PF: > { %s1516_s16 = sand.u32 1, %s2615_s18   ;;  %p2902_p12 = scmp.ge.s32.totalorder %s2627_s21, 2 }
 0x1db   : > { %s1517_s23 = scalar_lea.sflag [#allocation4], %s1516_s16 }
 0x1dc   : > { %p2379_p13 = pnand %p2902_p12, %p2704_p6 }
 0x1de   : > { %p2380_p0 = pneg %p2379_p13 }
 0x1e0   : > { %2610 = dma.done.wait (%p2380_p0), %s1517_s23, 256  }
 0x1e1   : > { %2612 = vsyncadd (%p2380_p0), %s1517_s23, 4294967040  ;;  %p20_p3 = scmp.ge.s32.totalorder %s2740_s30, 4   ;;  %s2903_s18 = smov %s2619_s19 }
 0x1e2   : > { %s2904_s19 = smov %s2623_s20  ;;  %s2905_s20 = smov %s2750_s9 }
 0x1e3   : > { %s2906_s21 = smov %s2740_s30  ;;  %22 = sbr.rel (!%p20_p3) target bundleno = 7 (0x7), region = 97 }
 0x1e8   :  { %1523 = vsyncpa [#allocation3], 1 }
 0x1e9   :  { %1525 = vsyncpa [#allocation3 + $0x1], 1 }
 0x1ea   :  { %1526 = vsyncpa [#allocation6], 1 }
 0x1eb   :  { %1527 = vsyncpa [#allocation9], 1 }
 0x1ec   :  { %1528 = vsyncpa [#allocation4], 1 }
 0x1ed   :  { %1530 = vsyncpa [#allocation4 + $0x1], 1 }

</bundles_post_ra>
